<compile_context>
chip_gen: v5e
topology: v5e:2x2
jax: 0.10.0
libtpu: 0.0.40
codegen_flags: <defaults>
</compile_context>

<pallas_src>
import functools

import numpy as np
import jax
import jax.numpy as jnp
from jax import lax
from jax.experimental import pallas as pl
from jax.experimental.pallas import tpu as pltpu


def _round_up(x: int, m: int) -> int:
    return (x + m - 1) // m * m


def _vmem_limit(block_bytes: int, extra_bytes: int = 0,
                cap: int = 48 * 1024 * 1024) -> int:
    """Derive the scoped-VMEM request from the double-buffered block footprint."""
    need = 2 * block_bytes + extra_bytes + (4 << 20)
    return int(min(max(need, 32 << 20), cap))


# -----------------------------------------------------------------------------
# Host-side helper: 1-D bilinear interpolation matrix reproducing
# F.interpolate(mode='bilinear', align_corners=False) along one axis.
# -----------------------------------------------------------------------------
def _bilinear_matrix(in_size: int, out_size: int) -> np.ndarray:
    scale = in_size / out_size
    dst = np.arange(out_size)
    src = (dst + 0.5) * scale - 0.5
    src = np.maximum(src, 0.0)                       # PyTorch clamps negatives to 0
    i0 = np.minimum(np.floor(src).astype(np.int64), in_size - 1)
    i1 = np.minimum(i0 + 1, in_size - 1)
    lam = np.clip(src - i0, 0.0, 1.0)
    w = np.zeros((out_size, in_size), dtype=np.float32)
    np.add.at(w, (dst, i0), 1.0 - lam)
    np.add.at(w, (dst, i1), lam)
    return w


@functools.lru_cache(maxsize=None)
def _interp_matrices(hi, wi, ho, wo, ho_pad, wo_pad):
    """Cached, padded interpolation matrices (built once per shape, uploaded once)."""
    wh = _bilinear_matrix(hi, ho)                    # (Ho, Hi)
    ww = _bilinear_matrix(wi, wo)                    # (Wo, Wi)
    wh_p = np.zeros((ho_pad, hi), np.float32)
    wh_p[:ho] = wh
    wwT_p = np.zeros((wi, wo_pad), np.float32)
    wwT_p[:, :wo] = ww.T
    return (jnp.asarray(wh_p, dtype=jnp.bfloat16),
            jnp.asarray(wwT_p, dtype=jnp.bfloat16))


# -----------------------------------------------------------------------------
# Kernel 1: separable bilinear resize, width stage only.
#   per image: (C*Hi, Wi) bf16 @ (Wi, Wo_pad) bf16 -> (C*Hi, Wo_pad) bf16
# -----------------------------------------------------------------------------
def _width_resize_kernel(x_ref, w_ref, o_ref):
    o_ref[0] = jnp.dot(x_ref[0], w_ref[...],
                       preferred_element_type=jnp.float32).astype(o_ref.dtype)


def _width_resize(x, wwT, wo_pad):
    """x: (N, C, Hi, Wi) -> (N, C, Hi, Wo_pad) bf16; columns >= Wo are zero."""
    n, c, hi, wi = (int(d) for d in x.shape)
    r = c * hi
    xr = x.astype(jnp.bfloat16).reshape(n, r, wi)    # free host reshape (contiguous)

    tr = r                                           # full rows: no pad, no slice
    for cand in (512, 256, 128, 64, 32, 16):         # tile rows only when it divides
        if r % cand == 0:
            tr = cand
            break

    block_bytes = 2 * (tr * wi + wi * wo_pad + tr * wo_pad)    # bf16 blocks per step
    out = pl.pallas_call(
        _width_resize_kernel,
        out_shape=jax.ShapeDtypeStruct((n, r, wo_pad), jnp.bfloat16),
        grid=(n, r // tr),
        in_specs=[
            pl.BlockSpec((1, tr, wi), lambda i, j: (i, j, 0)),
            pl.BlockSpec((wi, wo_pad), lambda i, j: (0, 0)),
        ],
        out_specs=pl.BlockSpec((1, tr, wo_pad), lambda i, j: (i, j, 0)),
        compiler_params=pltpu.CompilerParams(
            dimension_semantics=("parallel", "parallel"),
            vmem_limit_bytes=_vmem_limit(block_bytes)),
    )(xr, wwT)
    return out.reshape(n, c, hi, wo_pad)             # free host reshape (contiguous)


# -----------------------------------------------------------------------------
# Kernel 2: fused height-resize + per-pixel cross-entropy + focal weighting.
#   Emits per-(image, group) partial sums; grid = (N, G, height-tiles).
# -----------------------------------------------------------------------------
def _focal_kernel(wh_ref, tw_ref, lab_ref, out_ref, acc_ref, *,
                  alpha, gamma, n_classes, ho, wo, ho_pad, wo_pad, th,
                  tiles_per_group):
    t = pl.program_id(2)

    @pl.when(t == 0)
    def _():
        acc_ref[...] = jnp.zeros_like(acc_ref)

    wh = wh_ref[...]                                 # (th, Hi) bf16 height weights
    lab = lab_ref[0].astype(jnp.int32)               # (th, Wo_pad)

    # Fused height resize: one (th, Hi) @ (Hi, Wo_pad) MXU matmul per class.
    # TODO(synk): for very large class counts, replace the unrolled per-class
    # matmuls with a batched einsum / chunked in-kernel loop over classes.
    zs = [jnp.dot(wh, tw_ref[0, cls], preferred_element_type=jnp.float32)
          for cls in range(n_classes)]               # each (th, Wo_pad) f32

    m = zs[0]
    for z in zs[1:]:
        m = jnp.maximum(m, z)
    es = [jnp.exp(z - m) for z in zs]                # reused for denom AND pt
    denom = es[0]
    for e in es[1:]:
        denom = denom + e

    # target-class logit / exp via one-hot selects (VPU); EUP work stays at
    # C exps + 1 log + 1 approx reciprocal per pixel (no exp(-ce)).
    tgt_z = jnp.zeros_like(m)
    tgt_e = jnp.zeros_like(m)
    for cls in range(n_classes):
        sel = lab == cls
        tgt_z = jnp.where(sel, zs[cls], tgt_z)
        tgt_e = jnp.where(sel, es[cls], tgt_e)

    ce = (m - tgt_z) + jnp.log(denom)                # lse - z_target >= 0
    pt = tgt_e * pl.reciprocal(denom, approx=True)   # exp(-ce) without the exp
    omp = 1.0 - pt

    ig = int(gamma)
    if float(gamma) == float(ig) and 0 <= ig <= 8:   # small integer gamma -> multiplies
        if ig == 0:
            w = jnp.ones_like(omp)
        else:
            w = omp
            for _ in range(ig - 1):
                w = w * omp
    else:
        w = jnp.power(omp, gamma)
    focal = alpha * w * ce                           # (th, Wo_pad)

    # mask padded rows / columns (only emitted when padding actually exists)
    mask = None
    if wo_pad != wo:
        col = lax.broadcasted_iota(jnp.int32, focal.shape, 1)
        mask = col < wo
    if ho_pad != ho:
        g = pl.program_id(1)
        row = (lax.broadcasted_iota(jnp.int32, focal.shape, 0)
               + (g * tiles_per_group + t) * th)
        rmask = row < ho
        mask = rmask if mask is None else (mask & rmask)
    if mask is not None:
        focal = jnp.where(mask, focal, 0.0)

    acc_ref[...] += focal                            # VPU add; one reduce at the end

    @pl.when(t == tiles_per_group - 1)
    def _():
        out_ref[...] = jnp.sum(acc_ref[...]).reshape(1, 1, 1, 1)


def focal_loss(y_pred, y_true, alpha=0.25, gamma=2.0):
    """y_pred: (N, C, Hp, Wp) logits (NCHW), y_true: (N, H, W) int labels."""
    n, c, hi, wi = (int(d) for d in y_pred.shape)
    ho, wo = int(y_true.shape[1]), int(y_true.shape[2])

    wo_pad = _round_up(wo, 128)                      # lane-dense width
    th = 128 if ho >= 128 else _round_up(ho, 32)     # mult of 32 (int8 label tiling)
    # keep the per-step live working set (C f32 logits + exps) modest
    while th > 32 and c * th * wo_pad * 4 * 3 > (9 << 20):
        th //= 2
    ho_pad = _round_up(ho, th)
    num_t = ho_pad // th
    groups = 2 if (num_t % 2 == 0 and num_t >= 2) else 1   # extra parallel axis (v7x)
    tpg = num_t // groups

    wh, wwT = _interp_matrices(hi, wi, ho, wo, ho_pad, wo_pad)

    # stage 1: width resize (bf16 intermediate; HBM traffic ~Hi/Ho of full logits)
    logits_w = _width_resize(y_pred, wwT, wo_pad)    # (N, C, Hi, Wo_pad) bf16

    lab_dtype = jnp.int8 if c <= 127 else jnp.int32
    labels = y_true.astype(lab_dtype)
    labels = jnp.pad(labels, ((0, 0), (0, ho_pad - ho), (0, wo_pad - wo)))

    kernel = functools.partial(
        _focal_kernel, alpha=float(alpha), gamma=float(gamma), n_classes=c,
        ho=ho, wo=wo, ho_pad=ho_pad, wo_pad=wo_pad, th=th, tiles_per_group=tpg)

    lab_bytes = np.dtype(lab_dtype).itemsize
    block_bytes = (th * hi * 2) + (c * hi * wo_pad * 2) + (th * wo_pad * lab_bytes) + 4
    extra_bytes = th * wo_pad * 4 + c * th * wo_pad * 4 * 3   # scratch + live f32 tiles

    per_sums = pl.pallas_call(
        kernel,
        out_shape=jax.ShapeDtypeStruct((n, groups, 1, 1), jnp.float32),
        grid=(n, groups, tpg),
        in_specs=[
            pl.BlockSpec((th, hi), lambda i, g, t: (g * tpg + t, 0)),
            # constant across (g, t): resident per image, fetched once per image
            pl.BlockSpec((1, c, hi, wo_pad), lambda i, g, t: (i, 0, 0, 0)),
            pl.BlockSpec((1, th, wo_pad), lambda i, g, t: (i, g * tpg + t, 0)),
        ],
        out_specs=pl.BlockSpec((1, 1, 1, 1), lambda i, g, t: (i, g, 0, 0)),
        scratch_shapes=[pltpu.VMEM((th, wo_pad), jnp.float32)],
        compiler_params=pltpu.CompilerParams(
            dimension_semantics=("parallel", "parallel", "arbitrary"),
            vmem_limit_bytes=_vmem_limit(block_bytes, extra_bytes)),
    )(wh, logits_w, labels)

    return jnp.sum(per_sums) / jnp.float32(n * ho * wo)


# -----------------------------------------------------------------------------
# Pure-JAX f32 reference (same math, no Pallas) for a sanity check.
# -----------------------------------------------------------------------------
def focal_loss_ref(y_pred, y_true, alpha=0.25, gamma=2.0):
    n, c, hi, wi = y_pred.shape
    ho, wo = int(y_true.shape[1]), int(y_true.shape[2])
    wh = jnp.asarray(_bilinear_matrix(hi, ho))
    ww = jnp.asarray(_bilinear_matrix(wi, wo))
    resized = jnp.einsum('ab,ncbd,ed->ncae', wh, y_pred.astype(jnp.float32), ww)
    logp = jax.nn.log_softmax(resized, axis=1)
    ce = -jnp.take_along_axis(logp, y_true[:, None].astype(jnp.int32), axis=1)[:, 0]
    pt = jnp.exp(-ce)
    return jnp.mean(alpha * jnp.power(1.0 - pt, gamma) * ce)


if __name__ == "__main__":
    key = jax.random.PRNGKey(0)
    k1, k2 = jax.random.split(key)
    N, C, Hp, Wp = 2, 4, 8, 8          # predicted logits (lower resolution)
    H, W = 16, 16                      # label resolution (interpolation target)

    y_pred = jax.random.normal(k1, (N, C, Hp, Wp), dtype=jnp.float32)
    y_true = jax.random.randint(k2, (N, H, W), 0, C, dtype=jnp.int32)

    loss = focal_loss(y_pred, y_true, alpha=0.25, gamma=2.0)
    jax.block_until_ready(loss)

    ref = focal_loss_ref(y_pred, y_true, alpha=0.25, gamma=2.0)
    # bf16 matmul operands / intermediate + approx reciprocal -> loosened tolerance
    np.testing.assert_allclose(np.asarray(loss), np.asarray(ref),
                               rtol=3e-2, atol=3e-3)
    print("KERNEL_OK")
</pallas_src>

<mosaic_0001>
module attributes {stable_mosaic.version = 11 : i64} {
  func.func @_width_resize_kernel(%arg0: i32, %arg1: i32, %arg2: memref<1x32x8xbf16, #tpu.memory_space<vmem>>, %arg3: memref<8x128xbf16, #tpu.memory_space<vmem>>, %arg4: memref<1x32x128xbf16, #tpu.memory_space<vmem>>) attributes {dimension_semantics = [#tpu.dimension_semantics<parallel>, #tpu.dimension_semantics<parallel>], iteration_bounds = array<i64: 2, 1>, scalar_prefetch = 0 : i64, scratch_operands = 0 : i64, tpu.core_type = #tpu.core_type<tc>, window_params = [{transform_indices = @transform_0, window_bounds = array<i64: 1, 32, 8>}, {pipeline_mode = #tpu.pipeline_mode<synchronous>, transform_indices = @transform_1, window_bounds = array<i64: 8, 128>}, {transform_indices = @transform_2, window_bounds = array<i64: 1, 32, 128>}]} {
    %c0 = arith.constant 0 : index
    %c0_0 = arith.constant 0 : index
    %c0_1 = arith.constant 0 : index
    %0 = vector.load %arg2[%c0, %c0_0, %c0_1] : memref<1x32x8xbf16, #tpu.memory_space<vmem>>, vector<1x32x8xbf16>
    %1 = vector.shape_cast %0 : vector<1x32x8xbf16> to vector<32x8xbf16>
    %c0_2 = arith.constant 0 : index
    %c0_3 = arith.constant 0 : index
    %2 = vector.load %arg3[%c0_2, %c0_3] : memref<8x128xbf16, #tpu.memory_space<vmem>>, vector<8x128xbf16>
    %cst = arith.constant dense<0.000000e+00> : vector<32x128xf32>
    %3 = tpu.matmul %1, %2, %cst {dimension_numbers = #tpu.dot_dimension_numbers<[1], [0], [0], [1], [0, 0, 1, 1], [], []>} : vector<32x8xbf16>, vector<8x128xbf16>, vector<32x128xf32> -> vector<32x128xf32>
    %4 = arith.truncf %3 : vector<32x128xf32> to vector<32x128xbf16>
    %c0_4 = arith.constant 0 : index
    %c0_5 = arith.constant 0 : index
    %c0_6 = arith.constant 0 : index
    %5 = vector.load %arg4[%c0_4, %c0_5, %c0_6] : memref<1x32x128xbf16, #tpu.memory_space<vmem>>, vector<1x32x128xbf16>
    %6 = vector.shape_cast %5 : vector<1x32x128xbf16> to vector<32x128xbf16>
    %7 = vector.shape_cast %4 : vector<32x128xbf16> to vector<1x32x128xbf16>
    tpu.vector_store %arg4[%c0_4, %c0_5, %c0_6], %7 {strides = array<i32>} : memref<1x32x128xbf16, #tpu.memory_space<vmem>>, vector<1x32x128xbf16>,
    return
  }
  func.func @transform_0(%arg0: i32, %arg1: i32) -> (i32, i32, i32) {
    %c0_i32 = arith.constant 0 : i32
    %c0_i32_0 = arith.constant 0 : i32
    return %arg0, %arg1, %c0_i32 : i32, i32, i32
  }
  func.func @transform_1(%arg0: i32, %arg1: i32) -> (i32, i32) {
    %c0_i32 = arith.constant 0 : i32
    %c0_i32_0 = arith.constant 0 : i32
    %c0_i32_1 = arith.constant 0 : i32
    return %c0_i32, %c0_i32_0 : i32, i32
  }
  func.func @transform_2(%arg0: i32, %arg1: i32) -> (i32, i32, i32) {
    %c0_i32 = arith.constant 0 : i32
    %c0_i32_0 = arith.constant 0 : i32
    return %arg0, %arg1, %c0_i32 : i32, i32, i32
  }
}

</mosaic_0001>

<bundles_post_ra>
// kernel: tpu_custom_call.1
= control target key start
LH: loop header
LB: loop body
LE: loop exit
PB: predicated region body
PF: predicated region fallthrough
CT: control target
= control target key end

     0   :  { %7 = vsyncpa [#allocation3], 0  ;;  %s617_s0 = inlined_call_operand.vmem [shape: bf16[2,32,8], index: 0, kind: input, shape index: {}]   ;;  %s618_s1 = inlined_call_operand.vmem [shape: bf16[8,128], index: 1, kind: input, shape index: {}]   ;;  %s619_s2 = inlined_call_operand.hbm [shape: bf16[2,32,128], index: 2, kind: output, shape index: {}]  }
   0x1   :  { %9 = vsyncpa [#allocation3 + $0x1], 0  ;;  %s517_s9 = smov 0   ;;  %s519_s10 = smov 0  }
   0x2   :  { %s521_s11 = smov 0   ;;  %s523_s12 = smov 0  }
   0x3   :  { %s525_s13 = smov 0   ;;  %s527_s14 = smov 0  }
   0x4 LB: > { %s324_s15 = sadd.s32 4294967295, %s498_s14   ;;  %s325_s16 = sadd.s32 4294967294, %s498_s14   ;;  %s498_s14 = sphi %s527_s14, %s15_s14   ;;  %s494_s13 = sphi %s525_s13, %s626_s13   ;;  %s490_s12 = sphi %s523_s12, %s625_s12   ;;  %s486_s11 = sphi %s521_s11, %s624_s11   ;;  %s482_s10 = sphi %s519_s10, %s623_s10   ;;  %s478_s9 = sphi %s517_s9, %s622_s9  }
   0x5   : > { %s27_s17 = sadd.s32 1, %s494_s13  ;;  %s85_s18 = sadd.s32 1, %s486_s11 }
   0x6   : > { %p29_p0 = scmp.ge.s32.totalorder %s27_s17, 2  ;;  %p95_p1 = scmp.ne.s32.totalorder %s486_s11, %s482_s10 }
   0x7   : > { %p96_p2 = scmp.eq.s32.totalorder %s324_s15, 1  ;;  %p101_p3 = scmp.ne.s32.totalorder %s482_s10, %s478_s9 }
   0x8   : > { %s628_s17 = smov (%p29_p0, %s27_s17), 0  ;;  %p102_p5 = scmp.eq.s32.totalorder %s325_s16, 1 }
   0x9   : > { %p557_p4 = por %p96_p2, %p95_p1  ;;  %s80_s20 = ssub.s32 %s494_s13, %s628_s17 }
   0xa   : > { %p328_p6 = scmp.ge.s32.totalorder %s498_s14, 1  ;;  %p83_p7 = scmp.eq.s32.totalorder %s80_s20, 0 }
   0xb   : > { %p564_p8 = por %p102_p5, %p101_p3  ;;  %p136_p9 = scmp.lt.s32.totalorder %s498_s14, 3 }
   0xc   : > { %s570_s22 = scalar_select %p83_p7, %s486_s11, %s85_s18  }
   0xd   : > { %p137_p10 = pnand %p328_p6, %p136_p9 }
   0xe   : > { %p163_p11 = scmp.lt.s32.totalorder (!%p137_p10), %s490_s12, 1  ;;  %s159_s30 = sand.u32 (!%p137_p10), 1, %s482_s10  }
   0xf   : > { %140 = sbr.rel (%p137_p10) target bundleno = 166 (0xa6), region = 28  ;;  %s329_s3 = sshll.u32 (!%p137_p10), %s159_s30, 4 }
  0x10   : > { %s350_s4 = sshll.u32 (!%p137_p10), %s490_s12, 4  ;;  %s161_s8 = scalar_lea.vmem (!%p137_p10), [#allocation2], %s329_s3 }
  0x11   : > { %s241_s7 = scalar_lea.hbm (!%p137_p10), %s619_s2, %s350_s4  ;;  %s242_s15 = sshll.u32 (!%p137_p10), %s161_s8, 4  ;;  %s243_s15 = int_to_ptr.vmem [resolvable:$true] %s242_s15 }
  0x12   : > { %s244_s16 = sshll.u32 (!%p137_p10), %s241_s7, 4  ;;  %s228_s18 = scalar_lea.sflag (!%p137_p10), [#allocation3], %s159_s30  ;;  %s245_s16 = int_to_ptr.hbm [resolvable:$true] %s244_s16 }
  0x13   : > { %s434_s20 = sshra.s32 (!%p137_p10), %s245_s16, 4  ;;  %s435_s20 = int_to_ptr.hbm [resolvable:$true] %s434_s20 }
  0x14   : > { %v178_v0 = vld [vmem:[%s618_s1] sm:$0xf]  ;;  %vm196_vm0 = vcmask 1043456   ;;  %s164_s25 = scalar_select %p163_p11, %s490_s12, 1  ;;  %vm189_vm1 = vcmask 64512  }
  0x15   : > { %v198_v1 = vsel %vm196_vm0, %v178_v0, 0  ;;  %s436_s12 = scalar_lea.hbm %s435_s20, 16  ;;  %p441_p1 = scmp.lt.s32.totalorder %s435_s20, %s619_s2 }
  0x16   : > { %207 = vmatpush.bf16.msra.mxu0 %v198_v1  ;;  %362 = vmatpush.bf16.msra.mxu1 %v198_v1  ;;  %s347_s26 = sshll.u32 %s164_s25, 4  ;;  %p437_p12 = scmp.ne.s32.totalorder %s435_s20, %s436_s12 }
  0x17   : > { %s170_s29 = scalar_lea.vmem %s617_s0, %s347_s26  ;;  %s440_s25 = scalar_lea.hbm %s619_s2, 32 }
  0x18   : > { %v348_v2 = vld [vmem:[%s170_s29] sm:$0xff]  ;;  %v349_v3 = vld [vmem:[%s170_s29 + $0x8] sm:$0xff]  ;;  %p438_p13 = pnand %p437_p12, %p557_p4  ;;  %p442_p2 = scmp.lt.s32.totalorder %s440_s25, %s436_s12 }
  0x19   : > { %340 = vmatmul.msk.bf16.vlgmr.msra.gmra.mxu0 %vm189_vm1, %v348_v2  ;;  %341 = vmatmul.msk.bf16.vlgmr.msra.gmra.mxu1 %vm189_vm1, %v349_v3 }
  0x1a   : > { %p439_p0 = pneg %p438_p13  ;;  %p443_p3 = por %p442_p2, %p441_p1 }
  0x1c   : > { %p444_p5 = pnand %p443_p3, %p439_p0 }
  0x96   : > { %v209_v4 = vpop.f32.mrf.mxu0  ;;  %v214_v5 = vpop.f32.mrf.mxu1 }
  0x9e   : > { %v211_v6 = vpop.f32.mrf.mxu0  ;;  %v216_v7 = vpop.f32.mrf.mxu1 }
  0x9f   : > { %v354_v8 = vpack.c.bf16 %v211_v6, %v209_v4  ;;  %v359_v9 = vpack.c.bf16 %v216_v7, %v214_v5 }
  0xa1   : > { %355 = vst [vmem:[%s161_s8] sm:$0xff] %v354_v8  }
  0xa2   : > { %361 = vst [vmem:[%s161_s8 + $0x8] sm:$0xff] %v359_v9  }
  0xa3   : > { %447 = shalt.err (!%p444_p5)
}
  0xa4   : > { %s500_s28 = smov 64   ;;  %s501_s29 = smov 4  }
  0xa5   : > { %363 = dma.vmem_to_hbm [thread:$0]  (%p557_p4), %s243_s15, 256, %s245_s16, %s228_s18, %s500_s28, %s500_s28, %s501_s29  }
  0xa6 PF: > { %p369_p6 = scmp.ge.s32.totalorder %s498_s14, 2  ;;  %s259_s30 = sand.u32 1, %s478_s9  }
  0xa7   : > { %s260_s3 = scalar_lea.sflag [#allocation3], %s259_s30 }
  0xa8   : > { %p366_p7 = pnand %p369_p6, %p564_p8 }
  0xaa   : > { %p367_p9 = pneg %p366_p7 }
  0xac   : > { %473 = dma.done.wait (%p367_p9), %s260_s3, 256  }
  0xad   : > { %475 = vsyncadd (%p367_p9), %s260_s3, 4294967040  ;;  %s15_s14 = sadd.s32 1, %s498_s14   ;;  %s622_s9 = smov %s482_s10 }
  0xae   : > { %p12_p10 = scmp.ge.s32.totalorder %s15_s14, 4   ;;  %s623_s10 = smov %s486_s11 }
  0xaf   : > { %s624_s11 = smov %s570_s22  ;;  %s625_s12 = smov %s494_s13 }
  0xb0   : > { %s626_s13 = smov %s628_s17  ;;  %14 = sbr.rel (!%p12_p10) target bundleno = 4 (0x4), region = 63 }
  0xb5   :  { %266 = vsyncpa [#allocation3], 1 }
  0xb6   :  { %268 = vsyncpa [#allocation3 + $0x1], 1 }

</bundles_post_ra>
